<compile_context>
chip_gen: v7x
topology: tpu7x:2x2x1
jax: 0.10.0
libtpu: 0.0.40
codegen_flags: <defaults>
</compile_context>

<pallas_src>
import math

import jax
import jax.numpy as jnp
from jax.experimental import pallas as pl
from jax.experimental.pallas import tpu as pltpu

# ----------------------------- small config --------------------------------
N = 2            # batch
T = 8            # sequence length == max_length (torch code requires this)
H = 32           # hidden_dim / word_embedding_dim
NUM_HEADS = 2
DK = 16          # dim_k == dim_q == dim_v
DFF = 64         # dim_feedforward
VOCAB = 50
EPS = 1e-5
LANE = 128       # lane-padded width for bias slab rows and final logits

# column layout of the packed (H, 320) weight slab
QKV_OFF = 0                                 # (H, 3*NH*DK) = (32, 96)
WO_OFF = QKV_OFF + 3 * NUM_HEADS * DK       # 96   (NH*DK == H -> (32, 32))
W1_OFF = WO_OFF + H                         # 128  (H, DFF)
WF_OFF = W1_OFF + DFF                       # 192  (H, 128) zero-padded final linear
WA_COLS = WF_OFF + LANE                     # 320

# row layout of the packed (9, 128) bias / LayerNorm-parameter slab
(R_BQKV, R_BO, R_B1, R_B2, R_GMH, R_BMH, R_GFFN, R_BFFN, R_BF) = range(9)


# ------------------------------- kernel ------------------------------------
def transformer_kernel(x_ref, wa_ref, w2_ref, vec_ref, out_ref):
    n, t, hdim = x_ref.shape
    nh, dk, dff = NUM_HEADS, DK, DFF
    scale = 1.0 / math.sqrt(dk)

    x = x_ref[...]                                     # (N, T, H)
    x2 = x.reshape(n * t, hdim)                        # (N*T, H)

    # ---- static slices of the packed parameter slabs -----------------------
    w_qkv = wa_ref[:, QKV_OFF:QKV_OFF + 3 * nh * dk]   # (H, 3*NH*DK)
    w_o = wa_ref[:, WO_OFF:WO_OFF + hdim]              # (NH*DK, H)   (NH*DK == H)
    w_1 = wa_ref[:, W1_OFF:W1_OFF + dff]               # (H, DFF)
    w_f = wa_ref[:, WF_OFF:WF_OFF + LANE]              # (H, 128) cols >=2 are zero
    w_2 = w2_ref[...]                                  # (DFF, H)

    b_qkv = vec_ref[R_BQKV:R_BQKV + 1, 0:3 * nh * dk]  # (1, 96)
    b_o = vec_ref[R_BO:R_BO + 1, 0:hdim]
    b_1 = vec_ref[R_B1:R_B1 + 1, 0:dff]
    b_2 = vec_ref[R_B2:R_B2 + 1, 0:hdim]
    g_mh = vec_ref[R_GMH:R_GMH + 1, 0:hdim]
    b_mh = vec_ref[R_BMH:R_BMH + 1, 0:hdim]
    g_ffn = vec_ref[R_GFFN:R_GFFN + 1, 0:hdim]
    b_ffn = vec_ref[R_BFFN:R_BFFN + 1, 0:hdim]
    b_f = vec_ref[R_BF:R_BF + 1, :]                    # (1, 128)

    def layer_norm(y, gamma, beta):
        mu = jnp.mean(y, axis=-1, keepdims=True)
        var = jnp.mean((y - mu) ** 2, axis=-1, keepdims=True)
        return (y - mu) * jax.lax.rsqrt(var + EPS) * gamma + beta

    # ------------------- multi-head self-attention --------------------------
    # one fused Q/K/V projection over all N*T rows
    qkv = jnp.dot(x2, w_qkv, preferred_element_type=jnp.float32) + b_qkv
    qkv = qkv.reshape(n, t, 3 * nh * dk)               # (N, T, 96)

    head_outs = []
    for h in range(nh):                                # static unroll, NH = 2
        q = qkv[:, :, h * dk:(h + 1) * dk]                              # (N, T, DK)
        k = qkv[:, :, nh * dk + h * dk:nh * dk + (h + 1) * dk]
        v = qkv[:, :, 2 * nh * dk + h * dk:2 * nh * dk + (h + 1) * dk]
        # contract DK of q and k directly (no transpose), batched over N
        s = jax.lax.dot_general(
            q, k, (((2,), (2,)), ((0,), (0,))),
            preferred_element_type=jnp.float32) * scale                  # (N, T, T)
        s = s - jnp.max(s, axis=-1, keepdims=True)
        p = jnp.exp(s)
        p = p * pl.reciprocal(jnp.sum(p, axis=-1, keepdims=True), approx=True)
        head_outs.append(jax.lax.dot_general(
            p, v, (((2,), (1,)), ((0,), (0,))),
            preferred_element_type=jnp.float32))                         # (N, T, DK)

    z = jnp.concatenate(head_outs, axis=-1).reshape(n * t, nh * dk)      # (N*T, NH*DK)
    attn = jnp.dot(z, w_o, preferred_element_type=jnp.float32) + b_o     # (N*T, H)
    a = layer_norm(attn + x2, g_mh, b_mh)                                # (N*T, H)

    # ----------------------------- feed-forward -----------------------------
    h1 = jnp.maximum(jnp.dot(a, w_1, preferred_element_type=jnp.float32) + b_1, 0.0)
    h2 = jnp.dot(h1, w_2, preferred_element_type=jnp.float32) + b_2
    f = layer_norm(a + h2, g_ffn, b_ffn)                                 # (N*T, H)

    # ---------------- final linear on the CLS token of each sequence --------
    cls = f.reshape(n, t, hdim)[:, 0:1, :].reshape(n, hdim)              # (N, H)
    # lane-dense (N, 128) store; columns >= 2 are zero and sliced off outside
    out_ref[...] = jnp.dot(cls, w_f, preferred_element_type=jnp.float32) + b_f


# --------------------------- parameter packing -------------------------------
def _pad_row(v, width=LANE):
    v = v.reshape(-1).astype(jnp.float32)
    return jnp.zeros((width,), jnp.float32).at[: v.shape[0]].set(v)


def pack_params(params):
    def heads_to_cols(w):                      # (NH, H, DK) -> (H, NH*DK)
        return jnp.transpose(w, (1, 0, 2)).reshape(H, NUM_HEADS * DK)

    w_qkv = jnp.concatenate(
        [heads_to_cols(params["wq"]), heads_to_cols(params["wk"]),
         heads_to_cols(params["wv"])], axis=1)                           # (H, 96)
    wf_pad = jnp.zeros((H, LANE), jnp.float32).at[:, :2].set(params["wf"])
    wa = jnp.concatenate(
        [w_qkv, params["wo"], params["w1"], wf_pad], axis=1).astype(jnp.float32)
    assert wa.shape == (H, WA_COLS), wa.shape

    b_qkv = jnp.concatenate(
        [params["bq"].reshape(-1), params["bk"].reshape(-1),
         params["bv"].reshape(-1)])                                      # (96,)
    vec = jnp.stack([
        _pad_row(b_qkv), _pad_row(params["bo"]), _pad_row(params["b1"]),
        _pad_row(params["b2"]), _pad_row(params["g_mh"]), _pad_row(params["b_mh"]),
        _pad_row(params["g_ffn"]), _pad_row(params["b_ffn"]), _pad_row(params["bf"]),
    ])                                                                   # (9, 128)
    return wa, params["w2"].astype(jnp.float32), vec


# ------------------------------- wrapper ------------------------------------
def classification_transformer(inputs, params):
    """inputs: int32 (N, T). Returns float32 (N, 2) logits."""
    n, t = inputs.shape
    # TODO(synk): embedding lookup (integer gather) stays in the JAX wrapper.
    emb = (params["word_emb"][inputs]
           + params["pos_emb"][jnp.arange(t)][None, :, :]).astype(jnp.float32)

    wa, w2, vec = pack_params(params)

    vmem = pl.BlockSpec(memory_space=pltpu.MemorySpace.VMEM)
    out = pl.pallas_call(
        transformer_kernel,
        out_shape=jax.ShapeDtypeStruct((n, LANE), jnp.float32),
        in_specs=[vmem, vmem, vmem, vmem],
        out_specs=vmem,
    )(emb, wa, w2, vec)
    return out[:, :2]


# --------------------------- pure-JAX reference ------------------------------
def reference_forward(inputs, params):
    x = params["word_emb"][inputs] + params["pos_emb"][jnp.arange(inputs.shape[1])][None]
    heads = []
    for h in range(NUM_HEADS):
        q = x @ params["wq"][h] + params["bq"][h]
        k = x @ params["wk"][h] + params["bk"][h]
        v = x @ params["wv"][h] + params["bv"][h]
        s = jnp.einsum("ntd,nsd->nts", q, k) / math.sqrt(DK)
        heads.append(jnp.einsum("nts,nsd->ntd", jax.nn.softmax(s, axis=-1), v))
    z = jnp.concatenate(heads, axis=-1) @ params["wo"] + params["bo"][0]

    def ln(y, g, b):
        mu = jnp.mean(y, axis=-1, keepdims=True)
        var = jnp.mean((y - mu) ** 2, axis=-1, keepdims=True)
        return (y - mu) / jnp.sqrt(var + EPS) * g[0] + b[0]

    a = ln(z + x, params["g_mh"], params["b_mh"])
    ff = jnp.maximum(a @ params["w1"] + params["b1"][0], 0.0) @ params["w2"] + params["b2"][0]
    f = ln(a + ff, params["g_ffn"], params["b_ffn"])
    return f[:, 0, :] @ params["wf"] + params["bf"][0]


# ------------------------------ param init ----------------------------------
def init_params(key):
    ks = jax.random.split(key, 16)

    def lin(k, fan_in, shape):
        return (jax.random.normal(k, shape, jnp.float32) / jnp.sqrt(fan_in)).astype(jnp.float32)

    return {
        "word_emb": jax.random.normal(ks[0], (VOCAB, H), jnp.float32) * 0.02,
        "pos_emb": jax.random.normal(ks[1], (T, H), jnp.float32) * 0.02,
        "wq": lin(ks[2], H, (NUM_HEADS, H, DK)),
        "bq": lin(ks[3], H, (NUM_HEADS, DK)),
        "wk": lin(ks[4], H, (NUM_HEADS, H, DK)),
        "bk": lin(ks[5], H, (NUM_HEADS, DK)),
        "wv": lin(ks[6], H, (NUM_HEADS, H, DK)),
        "bv": lin(ks[7], H, (NUM_HEADS, DK)),
        "wo": lin(ks[8], NUM_HEADS * DK, (NUM_HEADS * DK, H)),
        "bo": lin(ks[9], NUM_HEADS * DK, (1, H)),
        "g_mh": jnp.ones((1, H), jnp.float32),
        "b_mh": jnp.zeros((1, H), jnp.float32),
        "w1": lin(ks[10], H, (H, DFF)),
        "b1": lin(ks[11], H, (1, DFF)),
        "w2": lin(ks[12], DFF, (DFF, H)),
        "b2": lin(ks[13], DFF, (1, H)),
        "g_ffn": jnp.ones((1, H), jnp.float32),
        "b_ffn": jnp.zeros((1, H), jnp.float32),
        "wf": lin(ks[14], H, (H, 2)),
        "bf": lin(ks[15], H, (1, 2)),
    }


if __name__ == "__main__":
    key = jax.random.PRNGKey(0)
    pkey, ikey = jax.random.split(key)
    params = init_params(pkey)
    # token ids in [0, VOCAB); shape (N, T) — T == max_length as torch code requires
    inputs = jax.random.randint(ikey, (N, T), 0, VOCAB, dtype=jnp.int32)

    out = classification_transformer(inputs, params)
    out = jax.block_until_ready(out)

    ref = reference_forward(inputs, params)
    assert out.shape == (N, 2), out.shape
    assert jnp.allclose(out, ref, atol=1e-3, rtol=1e-3), (out, ref)
    print("KERNEL_OK")
</pallas_src>

<mosaic_0001>
module attributes {stable_mosaic.version = 11 : i64} {
  func.func @transformer_kernel(%arg0: memref<2x8x32xf32, #tpu.memory_space<vmem>>, %arg1: memref<32x320xf32, #tpu.memory_space<vmem>>, %arg2: memref<64x32xf32, #tpu.memory_space<vmem>>, %arg3: memref<9x128xf32, #tpu.memory_space<vmem>>, %arg4: memref<2x128xf32, #tpu.memory_space<vmem>>) attributes {dimension_semantics = [], scalar_prefetch = 0 : i64, scratch_operands = 0 : i64, tpu.core_type = #tpu.core_type<tc>} {
    %c0 = arith.constant 0 : index
    %c0_0 = arith.constant 0 : index
    %c0_1 = arith.constant 0 : index
    %0 = vector.load %arg0[%c0, %c0_0, %c0_1] : memref<2x8x32xf32, #tpu.memory_space<vmem>>, vector<2x8x32xf32>
    %1 = vector.shape_cast %0 : vector<2x8x32xf32> to vector<16x32xf32>
    %c0_2 = arith.constant 0 : index
    %c0_3 = arith.constant 0 : index
    %2 = vector.load %arg1[%c0_2, %c0_3] : memref<32x320xf32, #tpu.memory_space<vmem>>, vector<32x96xf32>
    %c0_4 = arith.constant 0 : index
    %c96 = arith.constant 96 : index
    %3 = vector.load %arg1[%c0_4, %c96] : memref<32x320xf32, #tpu.memory_space<vmem>>, vector<32x32xf32>
    %c0_5 = arith.constant 0 : index
    %c128 = arith.constant 128 : index
    %4 = vector.load %arg1[%c0_5, %c128] : memref<32x320xf32, #tpu.memory_space<vmem>>, vector<32x64xf32>
    %c0_6 = arith.constant 0 : index
    %c192 = arith.constant 192 : index
    %5 = vector.load %arg1[%c0_6, %c192] : memref<32x320xf32, #tpu.memory_space<vmem>>, vector<32x128xf32>
    %c0_7 = arith.constant 0 : index
    %c0_8 = arith.constant 0 : index
    %6 = vector.load %arg2[%c0_7, %c0_8] : memref<64x32xf32, #tpu.memory_space<vmem>>, vector<64x32xf32>
    %c0_9 = arith.constant 0 : index
    %c0_10 = arith.constant 0 : index
    %7 = vector.load %arg3[%c0_9, %c0_10] : memref<9x128xf32, #tpu.memory_space<vmem>>, vector<1x96xf32>
    %c1 = arith.constant 1 : index
    %c0_11 = arith.constant 0 : index
    %8 = vector.load %arg3[%c1, %c0_11] : memref<9x128xf32, #tpu.memory_space<vmem>>, vector<1x32xf32>
    %c2 = arith.constant 2 : index
    %c0_12 = arith.constant 0 : index
    %9 = vector.load %arg3[%c2, %c0_12] : memref<9x128xf32, #tpu.memory_space<vmem>>, vector<1x64xf32>
    %c3 = arith.constant 3 : index
    %c0_13 = arith.constant 0 : index
    %10 = vector.load %arg3[%c3, %c0_13] : memref<9x128xf32, #tpu.memory_space<vmem>>, vector<1x32xf32>
    %c4 = arith.constant 4 : index
    %c0_14 = arith.constant 0 : index
    %11 = vector.load %arg3[%c4, %c0_14] : memref<9x128xf32, #tpu.memory_space<vmem>>, vector<1x32xf32>
    %c5 = arith.constant 5 : index
    %c0_15 = arith.constant 0 : index
    %12 = vector.load %arg3[%c5, %c0_15] : memref<9x128xf32, #tpu.memory_space<vmem>>, vector<1x32xf32>
    %c6 = arith.constant 6 : index
    %c0_16 = arith.constant 0 : index
    %13 = vector.load %arg3[%c6, %c0_16] : memref<9x128xf32, #tpu.memory_space<vmem>>, vector<1x32xf32>
    %c7 = arith.constant 7 : index
    %c0_17 = arith.constant 0 : index
    %14 = vector.load %arg3[%c7, %c0_17] : memref<9x128xf32, #tpu.memory_space<vmem>>, vector<1x32xf32>
    %c8 = arith.constant 8 : index
    %c0_18 = arith.constant 0 : index
    %15 = vector.load %arg3[%c8, %c0_18] : memref<9x128xf32, #tpu.memory_space<vmem>>, vector<1x128xf32>
    %cst = arith.constant dense<0.000000e+00> : vector<16x96xf32>
    %16 = tpu.matmul %1, %2, %cst {dimension_numbers = #tpu.dot_dimension_numbers<[1], [0], [0], [1], [0, 0, 1, 1], [], []>} : vector<16x32xf32>, vector<32x96xf32>, vector<16x96xf32> -> vector<16x96xf32>
    %17 = vector.broadcast %7 : vector<1x96xf32> to vector<16x96xf32>
    %18 = arith.addf %16, %17 : vector<16x96xf32>
    %19 = vector.shape_cast %18 : vector<16x96xf32> to vector<2x8x96xf32>
    %20 = vector.extract_strided_slice %19 {offsets = [0, 0, 0], sizes = [2, 8, 16], strides = [1, 1, 1]} : vector<2x8x96xf32> to vector<2x8x16xf32>
    %21 = vector.extract_strided_slice %19 {offsets = [0, 0, 32], sizes = [2, 8, 16], strides = [1, 1, 1]} : vector<2x8x96xf32> to vector<2x8x16xf32>
    %22 = vector.extract_strided_slice %19 {offsets = [0, 0, 64], sizes = [2, 8, 16], strides = [1, 1, 1]} : vector<2x8x96xf32> to vector<2x8x16xf32>
    %cst_19 = arith.constant dense<0.000000e+00> : vector<2x8x8xf32>
    %23 = tpu.matmul %20, %21, %cst_19 {dimension_numbers = #tpu.dot_dimension_numbers<[2], [2], [1], [1], [0, 0, 0, 1, 1, 1], [0], [0]>} : vector<2x8x16xf32>, vector<2x8x16xf32>, vector<2x8x8xf32> -> vector<2x8x8xf32>
    %cst_20 = arith.constant 2.500000e-01 : f32
    %24 = vector.broadcast %cst_20 : f32 to vector<2x8x8xf32>
    %25 = arith.mulf %23, %24 : vector<2x8x8xf32>
    %cst_21 = arith.constant dense<0xFF800000> : vector<2x8xf32>
    %26 = vector.multi_reduction <maximumf>, %25, %cst_21 [2] : vector<2x8x8xf32> to vector<2x8xf32>
    %27 = vector.shape_cast %26 : vector<2x8xf32> to vector<2x8x1xf32>
    %28 = vector.broadcast %27 : vector<2x8x1xf32> to vector<2x8x8xf32>
    %29 = arith.subf %25, %28 : vector<2x8x8xf32>
    %30 = math.exp %29 : vector<2x8x8xf32>
    %cst_22 = arith.constant dense<0.000000e+00> : vector<2x8xf32>
    %31 = vector.multi_reduction <add>, %30, %cst_22 [2] : vector<2x8x8xf32> to vector<2x8xf32>
    %32 = vector.shape_cast %31 : vector<2x8xf32> to vector<2x8x1xf32>
    %33 = tpu.reciprocal %32 {approx = true} : vector<2x8x1xf32> -> vector<2x8x1xf32>
    %34 = vector.broadcast %33 : vector<2x8x1xf32> to vector<2x8x8xf32>
    %35 = arith.mulf %30, %34 : vector<2x8x8xf32>
    %cst_23 = arith.constant dense<0.000000e+00> : vector<2x8x16xf32>
    %36 = tpu.matmul %35, %22, %cst_23 {dimension_numbers = #tpu.dot_dimension_numbers<[2], [1], [1], [2], [0, 0, 0, 1, 1, 2], [0], [0]>} : vector<2x8x8xf32>, vector<2x8x16xf32>, vector<2x8x16xf32> -> vector<2x8x16xf32>
    %37 = vector.extract_strided_slice %19 {offsets = [0, 0, 16], sizes = [2, 8, 16], strides = [1, 1, 1]} : vector<2x8x96xf32> to vector<2x8x16xf32>
    %38 = vector.extract_strided_slice %19 {offsets = [0, 0, 48], sizes = [2, 8, 16], strides = [1, 1, 1]} : vector<2x8x96xf32> to vector<2x8x16xf32>
    %39 = vector.extract_strided_slice %19 {offsets = [0, 0, 80], sizes = [2, 8, 16], strides = [1, 1, 1]} : vector<2x8x96xf32> to vector<2x8x16xf32>
    %cst_24 = arith.constant dense<0.000000e+00> : vector<2x8x8xf32>
    %40 = tpu.matmul %37, %38, %cst_24 {dimension_numbers = #tpu.dot_dimension_numbers<[2], [2], [1], [1], [0, 0, 0, 1, 1, 1], [0], [0]>} : vector<2x8x16xf32>, vector<2x8x16xf32>, vector<2x8x8xf32> -> vector<2x8x8xf32>
    %cst_25 = arith.constant 2.500000e-01 : f32
    %41 = vector.broadcast %cst_25 : f32 to vector<2x8x8xf32>
    %42 = arith.mulf %40, %41 : vector<2x8x8xf32>
    %cst_26 = arith.constant dense<0xFF800000> : vector<2x8xf32>
    %43 = vector.multi_reduction <maximumf>, %42, %cst_26 [2] : vector<2x8x8xf32> to vector<2x8xf32>
    %44 = vector.shape_cast %43 : vector<2x8xf32> to vector<2x8x1xf32>
    %45 = vector.broadcast %44 : vector<2x8x1xf32> to vector<2x8x8xf32>
    %46 = arith.subf %42, %45 : vector<2x8x8xf32>
    %47 = math.exp %46 : vector<2x8x8xf32>
    %cst_27 = arith.constant dense<0.000000e+00> : vector<2x8xf32>
    %48 = vector.multi_reduction <add>, %47, %cst_27 [2] : vector<2x8x8xf32> to vector<2x8xf32>
    %49 = vector.shape_cast %48 : vector<2x8xf32> to vector<2x8x1xf32>
    %50 = tpu.reciprocal %49 {approx = true} : vector<2x8x1xf32> -> vector<2x8x1xf32>
    %51 = vector.broadcast %50 : vector<2x8x1xf32> to vector<2x8x8xf32>
    %52 = arith.mulf %47, %51 : vector<2x8x8xf32>
    %cst_28 = arith.constant dense<0.000000e+00> : vector<2x8x16xf32>
    %53 = tpu.matmul %52, %39, %cst_28 {dimension_numbers = #tpu.dot_dimension_numbers<[2], [1], [1], [2], [0, 0, 0, 1, 1, 2], [0], [0]>} : vector<2x8x8xf32>, vector<2x8x16xf32>, vector<2x8x16xf32> -> vector<2x8x16xf32>
    %54 = tpu.concatenate %36, %53 in 2 : vector<2x8x16xf32>, vector<2x8x16xf32> -> vector<2x8x32xf32>
    %55 = vector.shape_cast %54 : vector<2x8x32xf32> to vector<16x32xf32>
    %cst_29 = arith.constant dense<0.000000e+00> : vector<16x32xf32>
    %56 = tpu.matmul %55, %3, %cst_29 {dimension_numbers = #tpu.dot_dimension_numbers<[1], [0], [0], [1], [0, 0, 1, 1], [], []>} : vector<16x32xf32>, vector<32x32xf32>, vector<16x32xf32> -> vector<16x32xf32>
    %57 = vector.broadcast %8 : vector<1x32xf32> to vector<16x32xf32>
    %58 = arith.addf %56, %57 : vector<16x32xf32>
    %59 = arith.addf %58, %1 : vector<16x32xf32>
    %cst_30 = arith.constant dense<0.000000e+00> : vector<16xf32>
    %60 = vector.multi_reduction <add>, %59, %cst_30 [1] : vector<16x32xf32> to vector<16xf32>
    %61 = vector.shape_cast %60 : vector<16xf32> to vector<16x1xf32>
    %cst_31 = arith.constant 3.200000e+01 : f32
    %62 = vector.broadcast %cst_31 : f32 to vector<16x1xf32>
    %63 = arith.divf %61, %62 : vector<16x1xf32>
    %64 = vector.broadcast %63 : vector<16x1xf32> to vector<16x32xf32>
    %65 = arith.subf %59, %64 : vector<16x32xf32>
    %66 = arith.mulf %65, %65 : vector<16x32xf32>
    %cst_32 = arith.constant dense<0.000000e+00> : vector<16xf32>
    %67 = vector.multi_reduction <add>, %66, %cst_32 [1] : vector<16x32xf32> to vector<16xf32>
    %68 = vector.shape_cast %67 : vector<16xf32> to vector<16x1xf32>
    %cst_33 = arith.constant 3.200000e+01 : f32
    %69 = vector.broadcast %cst_33 : f32 to vector<16x1xf32>
    %70 = arith.divf %68, %69 : vector<16x1xf32>
    %71 = vector.broadcast %63 : vector<16x1xf32> to vector<16x32xf32>
    %72 = arith.subf %59, %71 : vector<16x32xf32>
    %cst_34 = arith.constant 9.99999974E-6 : f32
    %73 = vector.broadcast %cst_34 : f32 to vector<16x1xf32>
    %74 = arith.addf %70, %73 : vector<16x1xf32>
    %75 = math.rsqrt %74 : vector<16x1xf32>
    %76 = vector.broadcast %75 : vector<16x1xf32> to vector<16x32xf32>
    %77 = arith.mulf %72, %76 : vector<16x32xf32>
    %78 = vector.broadcast %11 : vector<1x32xf32> to vector<16x32xf32>
    %79 = arith.mulf %77, %78 : vector<16x32xf32>
    %80 = vector.broadcast %12 : vector<1x32xf32> to vector<16x32xf32>
    %81 = arith.addf %79, %80 : vector<16x32xf32>
    %cst_35 = arith.constant dense<0.000000e+00> : vector<16x64xf32>
    %82 = tpu.matmul %81, %4, %cst_35 {dimension_numbers = #tpu.dot_dimension_numbers<[1], [0], [0], [1], [0, 0, 1, 1], [], []>} : vector<16x32xf32>, vector<32x64xf32>, vector<16x64xf32> -> vector<16x64xf32>
    %83 = vector.broadcast %9 : vector<1x64xf32> to vector<16x64xf32>
    %84 = arith.addf %82, %83 : vector<16x64xf32>
    %cst_36 = arith.constant 0.000000e+00 : f32
    %85 = vector.broadcast %cst_36 : f32 to vector<16x64xf32>
    %86 = arith.maximumf %84, %85 : vector<16x64xf32>
    %cst_37 = arith.constant dense<0.000000e+00> : vector<16x32xf32>
    %87 = tpu.matmul %86, %6, %cst_37 {dimension_numbers = #tpu.dot_dimension_numbers<[1], [0], [0], [1], [0, 0, 1, 1], [], []>} : vector<16x64xf32>, vector<64x32xf32>, vector<16x32xf32> -> vector<16x32xf32>
    %88 = vector.broadcast %10 : vector<1x32xf32> to vector<16x32xf32>
    %89 = arith.addf %87, %88 : vector<16x32xf32>
    %90 = arith.addf %81, %89 : vector<16x32xf32>
    %cst_38 = arith.constant dense<0.000000e+00> : vector<16xf32>
    %91 = vector.multi_reduction <add>, %90, %cst_38 [1] : vector<16x32xf32> to vector<16xf32>
    %92 = vector.shape_cast %91 : vector<16xf32> to vector<16x1xf32>
    %cst_39 = arith.constant 3.200000e+01 : f32
    %93 = vector.broadcast %cst_39 : f32 to vector<16x1xf32>
    %94 = arith.divf %92, %93 : vector<16x1xf32>
    %95 = vector.broadcast %94 : vector<16x1xf32> to vector<16x32xf32>
    %96 = arith.subf %90, %95 : vector<16x32xf32>
    %97 = arith.mulf %96, %96 : vector<16x32xf32>
    %cst_40 = arith.constant dense<0.000000e+00> : vector<16xf32>
    %98 = vector.multi_reduction <add>, %97, %cst_40 [1] : vector<16x32xf32> to vector<16xf32>
    %99 = vector.shape_cast %98 : vector<16xf32> to vector<16x1xf32>
    %cst_41 = arith.constant 3.200000e+01 : f32
    %100 = vector.broadcast %cst_41 : f32 to vector<16x1xf32>
    %101 = arith.divf %99, %100 : vector<16x1xf32>
    %102 = vector.broadcast %94 : vector<16x1xf32> to vector<16x32xf32>
    %103 = arith.subf %90, %102 : vector<16x32xf32>
    %cst_42 = arith.constant 9.99999974E-6 : f32
    %104 = vector.broadcast %cst_42 : f32 to vector<16x1xf32>
    %105 = arith.addf %101, %104 : vector<16x1xf32>
    %106 = math.rsqrt %105 : vector<16x1xf32>
    %107 = vector.broadcast %106 : vector<16x1xf32> to vector<16x32xf32>
    %108 = arith.mulf %103, %107 : vector<16x32xf32>
    %109 = vector.broadcast %13 : vector<1x32xf32> to vector<16x32xf32>
    %110 = arith.mulf %108, %109 : vector<16x32xf32>
    %111 = vector.broadcast %14 : vector<1x32xf32> to vector<16x32xf32>
    %112 = arith.addf %110, %111 : vector<16x32xf32>
    %113 = vector.shape_cast %112 : vector<16x32xf32> to vector<2x8x32xf32>
    %114 = vector.extract_strided_slice %113 {offsets = [0, 0, 0], sizes = [2, 1, 32], strides = [1, 1, 1]} : vector<2x8x32xf32> to vector<2x1x32xf32>
    %115 = vector.shape_cast %114 : vector<2x1x32xf32> to vector<2x32xf32>
    %cst_43 = arith.constant dense<0.000000e+00> : vector<2x128xf32>
    %116 = tpu.matmul %115, %5, %cst_43 {dimension_numbers = #tpu.dot_dimension_numbers<[1], [0], [0], [1], [0, 0, 1, 1], [], []>} : vector<2x32xf32>, vector<32x128xf32>, vector<2x128xf32> -> vector<2x128xf32>
    %117 = vector.broadcast %15 : vector<1x128xf32> to vector<2x128xf32>
    %118 = arith.addf %116, %117 : vector<2x128xf32>
    %c0_44 = arith.constant 0 : index
    %c0_45 = arith.constant 0 : index
    %119 = vector.load %arg4[%c0_44, %c0_45] : memref<2x128xf32, #tpu.memory_space<vmem>>, vector<2x128xf32>
    tpu.vector_store %arg4[%c0_44, %c0_45], %118 {strides = array<i32>} : memref<2x128xf32, #tpu.memory_space<vmem>>, vector<2x128xf32>,
    return
  }
}

</mosaic_0001>

<bundles_post_ra>
// kernel: tpu_custom_call.1
= control target key start
LH: loop header
LB: loop body
LE: loop exit
PB: predicated region body
PF: predicated region fallthrough
CT: control target
= control target key end

     0   :  { %9 = vsyncpa [#allocation3], 0  ;;  %s1967_s0 = inlined_call_operand.hbm [shape: f32[2,8,32], index: 0, kind: input, shape index: {}]   ;;  %s1968_s1 = inlined_call_operand.vmem [shape: f32[32,320], index: 1, kind: input, shape index: {}]   ;;  %s1969_s2 = inlined_call_operand.vmem [shape: f32[64,32], index: 2, kind: input, shape index: {}]   ;;  %s1970_s3 = inlined_call_operand.hbm [shape: f32[9,128], index: 3, kind: input, shape index: {}]   ;;  %s1971_s4 = inlined_call_operand.hbm [shape: f32[2,128], index: 4, kind: output, shape index: {}]  }
   0x1   :  { %10 = vsyncpa [#allocation6], 0 }
   0x2   :  { %11 = vsyncpa [#allocation4], 0  ;;  %s1691_s15 = smov [#allocation2]   ;;  %s1619_s19 = scalar_lea.hbm %s1967_s0, 256 }
   0x3   :  { %s17_s16 = sshll.u32 %s1691_s15, 4  ;;  %p1620_p0 = scmp.ne.s32.totalorder %s1967_s0, %s1619_s19  ;;  %s18_s16 = int_to_ptr.vmem [resolvable:$true] %s17_s16 }
   0x4   :  { %p1623_p1 = scmp.lt.u32.totalorder %s1619_s19, %s1967_s0 }
   0x6   :  { %p1625_p2 = pnand %p1623_p1, %p1620_p0 }
   0x8   :  { %1628 = shalt.err (!%p1625_p2)
}
   0x9   :  { %s1629_s24 = scalar_lea.vmem %s18_s16, 256  ;;  %p1634_p4 = scmp.lt.s32.totalorder %s18_s16, %s18_s16 }
   0xa   :  { %p1630_p3 = scmp.ne.s32.totalorder %s18_s16, %s1629_s24  ;;  %p1635_p5 = scmp.lt.s32.totalorder %s1629_s24, %s1629_s24 }
   0xc   :  { %p1636_p6 = por %p1635_p5, %p1634_p4 }
   0xe   :  { %p1637_p7 = pnand %p1636_p6, %p1630_p3 }
  0x10   :  { %1640 = shalt.err (!%p1637_p7)
}
  0x11   :  { %s1692_s25 = smov 128   ;;  %s1693_s26 = smov 8  }
  0x12   :  { %23 = dma.hbm_to_vmem [thread:$0]  %s1967_s0, 256, %s18_s16, [#allocation3], %s1692_s25, %s1692_s25, %s1693_s26  }
  0x13   :  { %s1694_s29 = smov [#allocation5]   ;;  %s1641_s7 = scalar_lea.hbm %s1970_s3, 256 }
  0x14   :  { %s33_s30 = sshll.u32 %s1694_s29, 4  ;;  %p1642_p8 = scmp.ne.s32.totalorder %s1970_s3, %s1641_s7  ;;  %s34_s30 = int_to_ptr.vmem [resolvable:$true] %s33_s30 }
  0x15   :  { %p1645_p9 = scmp.lt.u32.totalorder %s1641_s7, %s1970_s3 }
  0x17   :  { %p1647_p10 = pnand %p1645_p9, %p1642_p8 }
  0x19   :  { %1650 = shalt.err (!%p1647_p10)
}
  0x1a   :  { %s1651_s12 = scalar_lea.vmem %s34_s30, 256  ;;  %p1656_p12 = scmp.lt.s32.totalorder %s34_s30, %s34_s30 }
  0x1b   :  { %p1652_p11 = scmp.ne.s32.totalorder %s34_s30, %s1651_s12  ;;  %p1657_p13 = scmp.lt.s32.totalorder %s1651_s12, %s1651_s12 }
  0x1d   :  { %p1658_p0 = por %p1657_p13, %p1656_p12 }
  0x1f   :  { %p1659_p1 = pnand %p1658_p0, %p1652_p11 }
  0x21   :  { %1662 = shalt.err (!%p1659_p1)
}
  0x22   :  { %39 = dma.hbm_to_vmem [thread:$0]  %s1970_s3, 256, %s34_s30, [#allocation6], %s1692_s25, %s1692_s25, %s1693_s26  }
  0x23   :  { %1685 = dma.done.wait [#allocation3], 256  }
  0x24   :  { %1686 = vsyncadd [#allocation3], 4294967040 }
  0x25   :  { %1687 = dma.done.wait [#allocation6], 256  }
  0x26   :  { %1688 = vsyncadd [#allocation6], 4294967040  ;;  %vm81_vm0 = vcmask 261120   ;;  %v1758_v0 = vld [vmem:[%s1968_s1] sm:$0xff]  ;;  %v1763_v1 = vld [vmem:[%s1968_s1 + $0x18] sm:$0xff]  ;;  %v1695_v9 = vmov 0.0  }
  0x27   :  { %v1768_v2 = vld [vmem:[%s1968_s1 + $0x30] sm:$0xff]  ;;  %v1565_v3 = vpack.i.bf16 %v1763_v1, %v1758_v0  ;;  %v1504_v4 = vpack.c.bf16 %v1763_v1, %v1758_v0  ;;  %v1777_v5 = vld [vmem:[%s1968_s1 + $0x48] sm:$0xff]  ;;  %v1779_v6 = vld [vmem:[#allocation2] sm:$0xff]  ;;  %1412 = vmatprep.subr.mxu1 %v1695_v9  ;;  %vm1696_vm1 = vmmov 0   ;;  %s1697_s21 = smov 96   ;;  %vm166_vm2 = vcmask 130048  }
  0x28   :  { %v1508_v7 = vpack.c.bf16 %v1777_v5, %v1768_v2  ;;  %1409 = vmatprep.mubr.msk.f32.mxu0 %vm81_vm0, %v1779_v6  ;;  %v1785_v8 = vld [vmem:[#allocation2 + $0x8] sm:$0xff]  ;;  %1414 = vmatprep.mubr.msk.f32.mxu1 %vm1696_vm1, %v1695_v9  ;;  %v1322_v10 = vld [vmem:[#allocation5] ss:$0 sm:$0xff]  ;;  %vm320_vm3 = vcmask 64512   ;;  %s1698_s22 = smov 64   ;;  %s1699_s23 = smov 80  }
  0x29   :  { %1505 = vmatprep.subr.bf16.mxu0 %v1504_v4  ;;  %s1700_s24 = smov 112   ;;  %s1701_s25 = smov 48   ;;  %vm1070_vm4 = vcmask 523264   ;;  %vm1199_vm5 = vcmask 1041409  }
  0x2a   :  { %1507 = vmatpush3.bf16.msra.mxu0 %v1504_v4  ;;  %s1702_s26 = smov 32   ;;  %s1703_s27 = smov 16  }
  0x2b   :  { %1509 = vmatprep.subr.bf16.mxu0 %v1508_v7 }
  0x2e   :  { %1511 = vmatpush3.bf16.msra.mxu0 %v1508_v7 }
  0x2f   :  { %1432 = vmatprep.subr.mxu0 %v1695_v9 }
  0x31   :  { %1410 = vmatmul.mubr.msk.f32.vlgmr.msra.gmra.mrb[0].mxu0 %vm81_vm0, %v1785_v8 }
  0x32   :  { %1434 = vmatprep.mubr.msk.f32.mxu0 %vm1696_vm1, %v1695_v9 }
 0x104   :  { %v1411_v11 = vpop.f32.mrb[0].mxu0 }
 0x105   :  { %v154_v12 = vpop.f32.mrb[1].mxu0  ;;  %v1798_v14 = vadd.f32 %v1411_v11, %v1322_v10 }
 0x106   :  { %v1795_v13 = vadd.f32 %v1322_v10, %v154_v12 }
 0x108   :  { %164 = vrot.lane.b32.xlu0 %v1795_v13, %s1697_s21 }
 0x10c   :  { %242 = vrot.lane.b32.xlu0 %v1798_v14, %s1697_s21 }
 0x17a   :  { %v165_v15 = vpop.permute.xlu0 %164 }
 0x17b   :  { %1413 = vmatpush3.xpose.msk.msra.mxu1 %vm166_vm2, %v165_v15 }
 0x17c   :  { %1417 = vmatprep.subr.mxu1 %v1695_v9 }
 0x17e   :  { %1415 = vmatmul.mubr.msk.f32.vlgmr.msra.gmra.mrb[0].mxu1 %vm166_vm2, %v1795_v13  ;;  %v243_v16 = vpop.permute.xlu0 %242 }
 0x17f   :  { %1418 = vmatpush3.xpose.msk.msra.mxu1 %vm166_vm2, %v243_v16  ;;  %1419 = vmatprep.mubr.msk.f32.mxu1 %vm1696_vm1, %v1695_v9 }
 0x180   :  { %1422 = vmatprep.subr.mxu1 %v1695_v9 }
 0x182   :  { %1420 = vmatmul.mubr.msk.f32.vlgmr.msra.gmra.mrb[2].mxu1 %vm166_vm2, %v1798_v14 }
 0x183   :  { %1424 = vmatprep.mubr.msk.f32.mxu1 %vm1696_vm1, %v1695_v9 }
 0x251   :  { %v237_v17 = vpop.f32.mrb[0].mxu1 }
 0x252   :  { %v318_v18 = vmul.f32 0.25, %v237_v17  ;;  %v1416_v19 = vpop.f32.mrb[1].mxu1 }
 0x254   :  { %v321_v20 = vsel %vm320_vm3, %v318_v18, -inf }
 0x255   :  { %322 = vmax.xlane.f32.xlu1 %v321_v20  ;;  %v314_v21 = vpop.f32.mrb[2].mxu1 }
 0x256   :  { %v319_v22 = vmul.f32 0.25, %v314_v21  ;;  %v1421_v23 = vpop.f32.mrb[3].mxu1 }
 0x258   :  { %v324_v24 = vsel %vm320_vm3, %v319_v22, -inf }
 0x259   :  { %325 = vmax.xlane.f32.xlu1 %v324_v24 }
 0x26a   :  { %343 = vrot.lane.b32.xlu1 %v1795_v13, %s1698_s22 }
 0x26e   :  { %419 = vrot.lane.b32.xlu1 %v1798_v14, %s1698_s22 }
 0x272   :  { %497 = vrot.lane.b32.xlu1 %v1795_v13, %s1699_s23 }
 0x276   :  { %575 = vrot.lane.b32.xlu1 %v1798_v14, %s1699_s23 }
 0x2e2   :  { %v323_v25 = vpop.xlane.xlu1 %322 }
 0x2e3   :  { %v327_v26 = vsub.f32 %v318_v18, %v323_v25 }
 0x2e5   :  { %v329_v27 = vmul.f32 1.442695, %v327_v26 }
 0x2e6   :  { %v326_v28 = vpop.xlane.xlu1 %325 }
 0x2e7   :  { %1595 = vpow2.f32 %v329_v27  ;;  %v328_v29 = vsub.f32 %v319_v22, %v326_v28 }
 0x2e9   :  { %v331_v30 = vmul.f32 1.442695, %v328_v29 }
 0x2ea   :  { %v344_v31 = vpop.permute.xlu1 %343 }
 0x2eb   :  { %1597 = vpow2.f32 %v331_v30  ;;  %1423 = vmatpush3.msra.mxu1 %v344_v31 }
 0x2ec   :  { %1427 = vmatprep.subr.mxu1 %v1695_v9 }
 0x2ee   :  { %v420_v32 = vpop.permute.xlu1 %419 }
 0x2f1   :  { %v1596_v33 = vpop.eup %1595 }
 0x2f2   :  { %v498_v34 = vpop.permute.xlu1 %497  ;;  %v333_v35 = vsel %vm320_vm3, %v1596_v33, 0.0 }
 0x2f3   :  { %334 = vadd.xlane.f32.xlu0 %v333_v35  ;;  %1433 = vmatpush3.xpose.msk.msra.mxu0 %vm166_vm2, %v498_v34 }
 0x2f4   :  { %1442 = vmatprep.subr.mxu0 %v1695_v9 }
 0x2f5   :  { %v1598_v36 = vpop.eup %1597 }
 0x2f6   :  { %v336_v37 = vsel %vm320_vm3, %v1598_v36, 0.0  ;;  %v576_v38 = vpop.permute.xlu1 %575 }
 0x2f7   :  { %337 = vadd.xlane.f32.xlu1 %v336_v37 }
 0x308   :  { %573 = vrot.lane.b32.xlu1 %v1798_v14, %s1700_s24 }
 0x309   :  { %495 = vrot.lane.b32.xlu0 %v1795_v13, %s1700_s24 }
 0x380   :  { %v335_v39 = vpop.xlane.xlu0 %334 }
 0x381   :  { %1599 = vrcp.f32 %v335_v39 }
 0x384   :  { %v338_v40 = vpop.xlane.xlu1 %337  ;;  %v496_v41 = vpop.permute.xlu0 %495 }
 0x385   :  { %1601 = vrcp.f32 %v338_v40  ;;  %1435 = vmatmul.mubr.msk.f32.vlgmr.msra.gmra.mrb[2].mxu0 %vm166_vm2, %v496_v41 }
 0x386   :  { %1444 = vmatprep.mubr.msk.f32.mxu0 %vm1696_vm1, %v1695_v9 }
 0x388   :  { %v574_v46 = vpop.permute.xlu1 %573 }
 0x38b   :  { %v1600_v42 = vpop.eup %1599 }
 0x38c   :  { %v341_v43 = vmul.f32 %v1600_v42, %v1596_v33  ;;  %v1337_v33 = vld [vmem:[#allocation5 + $0x1] ss:$0 sm:$0xff] }
 0x38e   :  { %1425 = vmatmul.mubr.msk.f32.vlgmr.msra.gmra.mrb[4].mxu1 %vm320_vm3, %v341_v43 }
 0x38f   :  { %v1602_v44 = vpop.eup %1601  ;;  %1428 = vmatpush3.msra.mxu1 %v420_v32  ;;  %1429 = vmatprep.mubr.msk.f32.mxu1 %vm1696_vm1, %v1695_v9 }
 0x390   :  { %v342_v45 = vmul.f32 %v1602_v44, %v1598_v36  ;;  %1437 = vmatprep.subr.mxu1 %v1695_v9 }
 0x392   :  { %1430 = vmatmul.mubr.msk.f32.vlgmr.msra.gmra.mrb[6].mxu1 %vm320_vm3, %v342_v45 }
 0x393   :  { %1439 = vmatprep.mubr.msk.f32.mxu1 %vm1696_vm1, %v1695_v9 }
 0x396   :  { %1438 = vmatpush3.xpose.msk.msra.mxu1 %vm166_vm2, %v576_v38 }
 0x397   :  { %1447 = vmatprep.subr.mxu1 %v1695_v9 }
 0x399   :  { %1440 = vmatmul.mubr.msk.f32.vlgmr.msra.gmra.mrb[8].mxu1 %vm166_vm2, %v574_v46 }
 0x39a   :  { %1449 = vmatprep.mubr.msk.f32.mxu1 %vm1696_vm1, %v1695_v9 }
 0x458   :  { %v569_v47 = vpop.f32.mrb[2].mxu0 }
 0x459   :  { %v651_v48 = vmul.f32 0.25, %v569_v47  ;;  %v1436_v49 = vpop.f32.mrb[3].mxu0 }
 0x45b   :  { %v653_v50 = vsel %vm320_vm3, %v651_v48, -inf }
 0x45c   :  { %654 = vmax.xlane.f32.xlu1 %v653_v50 }
 0x461   :  { %v1844_v51 = vpop.f32.mrb[4].mxu1 }
 0x462   :  { %v1426_v52 = vpop.f32.mrb[5].mxu1 }
 0x465   :  { %v1846_v53 = vpop.f32.mrb[6].mxu1 }
 0x466   :  { %v1431_v54 = vpop.f32.mrb[7].mxu1 }
 0x467   :  { %v1892_v54 = vld [vmem:[%s1968_s1 + $0x50] sm:$0xff] }
 0x46c   :  { %v647_v55 = vpop.f32.mrb[8].mxu1 }
 0x46d   :  { %v652_v56 = vmul.f32 0.25, %v647_v55  ;;  %v1441_v57 = vpop.f32.mrb[9].mxu1 }
 0x46e   :  { %v61_v57 = vld [vmem:[%s1969_s2 + $0x8] sm:$0xff] }
 0x46f   :  { %v656_v58 = vsel %vm320_vm3, %v652_v56, -inf }
 0x470   :  { %657 = vmax.xlane.f32.xlu0 %v656_v58  ;;  %v62_v58 = vld [vmem:[%s1969_s2 + $0x10] sm:$0xff] }
 0x486   :  { %751 = vrot.lane.b32.xlu0 %v1798_v14, %s1701_s25 }
 0x4e9   :  { %v655_v59 = vpop.xlane.xlu1 %654 }
 0x4ea   :  { %v659_v60 = vsub.f32 %v651_v48, %v655_v59 }
 0x4ec   :  { %v661_v61 = vmul.f32 1.442695, %v659_v60  ;;  %v63_v60 = vld [vmem:[%s1969_s2 + $0x18] sm:$0xff] }
 0x4ee   :  { %1603 = vpow2.f32 %v661_v61  ;;  %v1532_v61 = vpack.c.bf16 %v63_v60, %v62_v58 }
 0x4f8   :  { %v1604_v62 = vpop.eup %1603 }
 0x4f9   :  { %v665_v63 = vsel %vm320_vm3, %v1604_v62, 0.0 }
 0x4fa   :  { %666 = vadd.xlane.f32.xlu1 %v665_v63  ;;  %v65_v63 = vld [vmem:[%s1969_s2 + $0x28] sm:$0xff] }
 0x4fd   :  { %v658_v4 = vpop.xlane.xlu0 %657 }
 0x4fe   :  { %v660_v7 = vsub.f32 %v652_v56, %v658_v4  ;;  %v60_v56 = vld [vmem:[%s1969_s2] sm:$0xff] }
 0x4ff   :  { %v1528_v59 = vpack.c.bf16 %v61_v57, %v60_v56  ;;  %v1704_v57 = vmov 0.0|0.0  }
 0x500   :  { %v663_v10 = vmul.f32 1.442695, %v660_v7 }
 0x501   :  { %v752_v11 = vpop.permute.xlu0 %751 }
 0x502   :  { %1605 = vpow2.f32 %v663_v10  ;;  %1448 = vmatpush3.msra.mxu1 %v752_v11 }
 0x50c   :  { %v1606_v12 = vpop.eup %1605 }
 0x50d   :  { %v668_v15 = vsel %vm320_vm3, %v1606_v12, 0.0 }
 0x50e   :  { %669 = vadd.xlane.f32.xlu1 %v668_v15 }
 0x51f   :  { %675 = vrot.lane.b32.xlu1 %v1795_v13, %s1701_s25  ;;  %v1570_v13 = vpack.i.bf16 %v1777_v5, %v1768_v2 }
 0x523   :  { %1566 = vrot.lane.b32.xlu1 %v1565_v3, %s1702_s26 }
 0x527   :  { %1571 = vrot.lane.b32.xlu1 %v1570_v13, %s1702_s26 }
 0x587   :  { %v667_v14 = vpop.xlane.xlu1 %666 }
 0x588   :  { %1607 = vrcp.f32 %v667_v14 }
 0x592   :  { %v1608_v17 = vpop.eup %1607 }
 0x593   :  { %v673_v18 = vmul.f32 %v1608_v17, %v1604_v62  ;;  %v64_v62 = vld [vmem:[%s1969_s2 + $0x20] sm:$0xff]  ;;  %v1340_v17 = vld [vmem:[#allocation5 + $0x4] ss:$0 sm:$0xff] }
 0x594   :  { %v1536_v4 = vpack.c.bf16 %v65_v63, %v64_v62 }
 0x59b   :  { %v670_v16 = vpop.xlane.xlu1 %669 }
 0x59c   :  { %1609 = vrcp.f32 %v670_v16 }
 0x59f   :  { %v676_v19 = vpop.permute.xlu1 %675 }
 0x5a0   :  { %1443 = vmatpush3.msra.mxu0 %v676_v19  ;;  %v1341_v19 = vld [vmem:[#allocation5 + $0x5] ss:$0 sm:$0xff] }
 0x5a1   :  { %1445 = vmatmul.mubr.msk.f32.vlgmr.msra.gmra.mrb[4].mxu0 %vm320_vm3, %v673_v18 }
 0x5a3   :  { %v1567_v0 = vpop.permute.xlu1 %1566 }
 0x5a4   :  { %v1569_v1 = vunpack.i.h.bf16 %v1567_v0  ;;  %v1568_v3 = vunpack.i.l.bf16 %v1567_v0 }
 0x5a6   :  { %v1610_v20 = vpop.eup %1609  ;;  %v1512_v22 = vpack.c.bf16 %v1569_v1, %v1568_v3 }
 0x5a7   :  { %v674_v21 = vmul.f32 %v1610_v20, %v1606_v12  ;;  %v1572_v23 = vpop.permute.xlu1 %1571 }
 0x5a8   :  { %1513 = vmatprep.subr.bf16.mxu0 %v1512_v22  ;;  %v1574_v24 = vunpack.i.h.bf16 %v1572_v23  ;;  %v1573_v25 = vunpack.i.l.bf16 %v1572_v23  ;;  %v67_v23 = vld [vmem:[%s1969_s2 + $0x38] sm:$0xff] }
 0x5a9   :  { %1450 = vmatmul.mubr.msk.f32.vlgmr.msra.gmra.mrb[10].mxu1 %vm320_vm3, %v674_v21  ;;  %1515 = vmatpush3.bf16.msra.mxu0 %v1512_v22  ;;  %v66_v22 = vld [vmem:[%s1969_s2 + $0x30] sm:$0xff] }
 0x5aa   :  { %v1516_v26 = vpack.c.bf16 %v1574_v24, %v1573_v25  ;;  %v1540_v24 = vpack.c.bf16 %v67_v23, %v66_v22  ;;  %v1342_v25 = vld [vmem:[#allocation5 + $0x2] ss:$0 sm:$0xff] }
 0x5ac   :  { %1517 = vmatprep.subr.bf16.mxu0 %v1516_v26 }
 0x5ad   :  { %1519 = vmatpush3.bf16.msra.mxu0 %v1516_v26 }
 0x5ae   :  { %1529 = vmatprep.subr.bf16.mxu0 %v1528_v59 }
 0x674   :  { %v747_v27 = vpop.f32.mrb[4].mxu0 }
 0x675   :  { %829 = vrot.lane.b32.xlu0 %v747_v27, %s1703_s27  ;;  %v1446_v28 = vpop.f32.mrb[5].mxu0 }
 0x67c   :  { %v823_v29 = vpop.f32.mrb[10].mxu1 }
 0x67d   :  { %831 = vrot.lane.b32.xlu1 %v823_v29, %s1703_s27  ;;  %v1451_v2 = vpop.f32.mrb[11].mxu1 }
 0x6e7   :  { %v830_v5 = vpop.permute.xlu0 %829 }
 0x6e8   :  { %v835_v30 = vsel %vm166_vm2, %v1844_v51, %v830_v5  ;;  %v1880_v51 = vld [vmem:[%s1968_s1 + $0x20] sm:$0xff] }
 0x6e9   :  { %1460 = vmatprep.mubr.msk.f32.mxu0 %vm81_vm0, %v835_v30 }
 0x6ef   :  { %v832_v31 = vpop.permute.xlu1 %831 }
 0x6f0   :  { %v836_v32 = vsel %vm166_vm2, %v1846_v53, %v832_v31  ;;  %v1887_v53 = vld [vmem:[%s1968_s1 + $0x38] sm:$0xff] }
 0x6f1   :  { %1461 = vmatmul.mubr.msk.f32.vlgmr.msra.gmra.mrb[6].mxu0 %vm81_vm0, %v836_v32  ;;  %v1524_v55 = vpack.c.bf16 %v1892_v54, %v1887_v53 }
 0x6f2   :  { %1531 = vmatpush3.bf16.msra.mxu0 %v1528_v59 }
 0x6f3   :  { %1533 = vmatprep.subr.bf16.mxu0 %v1532_v61 }
 0x6f6   :  { %1535 = vmatpush3.bf16.msra.mxu0 %v1532_v61 }
 0x6f7   :  { %1537 = vmatprep.subr.bf16.mxu0 %v1536_v4 }
 0x6fa   :  { %1539 = vmatpush3.bf16.msra.mxu0 %v1536_v4 }
 0x6fb   :  { %1541 = vmatprep.subr.bf16.mxu0 %v1540_v24 }
 0x6fe   :  { %1543 = vmatpush3.bf16.msra.mxu0 %v1540_v24 }
 0x7c4   :  { %v1462_v34 = vpop.f32.mrb[6].mxu0 }
 0x7c5   :  { %v935_v35 = vadd.f32 %v1462_v34, %v1337_v33  ;;  %v929_v36 = vpop.f32.mrb[7].mxu0 }
 0x7c6   :  { %v930_v37 = vadd.f32 %v1337_v33, %v929_v36 }
 0x7c7   :  { %v939_v38 = vadd.f32 %v935_v35, %v1785_v8 }
 0x7c8   :  { %v938_v39 = vadd.f32 %v930_v37, %v1779_v6  ;;  %v1875_v6 = vld [vmem:[%s1968_s1 + $0x8] sm:$0xff] }
 0x7c9   :  { %v943_v40 = vsel %vm81_vm0, %v939_v38, 0.0  ;;  %v1520_v52 = vpack.c.bf16 %v1880_v51, %v1875_v6 }
 0x7ca   :  { %944 = vadd.xlane.f32.xlu1 %v943_v40  ;;  %v940_v41 = vsel %vm81_vm0, %v938_v39, 0.0 }
 0x7cb   :  { %941 = vadd.xlane.f32.xlu0 %v940_v41  ;;  %1521 = vmatprep.subr.bf16.mxu1 %v1520_v52 }
 0x7cc   :  { %1523 = vmatpush3.bf16.msra.mxu1 %v1520_v52  ;;  %v57_v52 = vld [vmem:[%s1968_s1 + $0x28] sm:$0xff] }
 0x7cd   :  { %1525 = vmatprep.subr.bf16.mxu1 %v1524_v55  ;;  %v1580_v56 = vpack.i.bf16 %v57_v52, %v1880_v51 }
 0x7d0   :  { %1527 = vmatpush3.bf16.msra.mxu1 %v1524_v55 }
 0x7d1   :  { %1544 = vmatprep.subr.bf16.mxu1 %v1704_v57 }
 0x857   :  { %v945_v42 = vpop.xlane.xlu1 %944 }
 0x858   :  { %v948_v43 = vmul.f32 0.03125, %v945_v42  ;;  %v942_v44 = vpop.xlane.xlu0 %941 }
 0x859   :  { %v947_v45 = vmul.f32 0.03125, %v942_v44 }
 0x85a   :  { %v950_v46 = vsub.f32 %v939_v38, %v948_v43  ;;  %v56_v38 = vld [vmem:[%s1968_s1 + $0x10] sm:$0xff] }
 0x85b   :  { %v949_v47 = vsub.f32 %v938_v39, %v947_v45  ;;  %v1575_v39 = vpack.i.bf16 %v56_v38, %v1875_v6  ;;  %v59_v6 = vld [vmem:[%s1968_s1 + $0x58] sm:$0xff] }
 0x85c   :  { %v952_v50 = vmul.f32 %v950_v46, %v950_v46  ;;  %v1590_v55 = vpack.i.bf16 %v59_v6, %v1892_v54 }
 0x85d   :  { %v951_v48 = vmul.f32 %v949_v47, %v949_v47 }
 0x85e   :  { %v956_v8 = vsel %vm81_vm0, %v952_v50, 0.0  ;;  %v58_v50 = vld [vmem:[%s1968_s1 + $0x40] sm:$0xff]  ;;  %s1705_s1 = smov [#allocation7]  }
 0x85f   :  { %v953_v49 = vsel %vm81_vm0, %v951_v48, 0.0 }
 0x860   :  { %954 = vadd.xlane.f32.xlu0 %v953_v49 }
 0x864   :  { %957 = vadd.xlane.f32.xlu0 %v956_v8  ;;  %v1585_v8 = vpack.i.bf16 %v58_v50, %v1887_v53 }
 0x8ed   :  { %v955_v7 = vpop.xlane.xlu0 %954 }
 0x8ee   :  { %v959_v10 = vmul.f32 0.03125, %v955_v7 }
 0x8f0   :  { %v961_v11 = vadd.f32 1e-05, %v959_v10 }
 0x8f1   :  { %v958_v12 = vpop.xlane.xlu0 %957 }
 0x8f2   :  { %1611 = vrsqrt.f32 %v961_v11  ;;  %v960_v15 = vmul.f32 0.03125, %v958_v12 }
 0x8f4   :  { %v962_v14 = vadd.f32 1e-05, %v960_v15 }
 0x8f6   :  { %1613 = vrsqrt.f32 %v962_v14 }
 0x8fc   :  { %v1612_v16 = vpop.eup %1611 }
 0x8fd   :  { %v965_v18 = vmul.f32 %v1612_v16, %v949_v47 }
 0x8ff   :  { %v971_v20 = vmul.f32 %v1340_v17, %v965_v18 }
 0x900   :  { %v1614_v21 = vpop.eup %1613 }
 0x901   :  { %v966_v13 = vmul.f32 %v1614_v21, %v950_v46  ;;  %v977_v0 = vadd.f32 %v1341_v19, %v971_v20 }
 0x903   :  { %v972_v1 = vmul.f32 %v1340_v17, %v966_v13  ;;  %1471 = vmatprep.mubr.msk.f32.mxu1 %vm81_vm0, %v977_v0 }
 0x905   :  { %v978_v3 = vadd.f32 %v1341_v19, %v972_v1 }
 0x907   :  { %1472 = vmatmul.mubr.msk.f32.vlgmr.msra.gmra.mrb[12].mxu1 %vm81_vm0, %v978_v3 }
 0x908   :  { %1501 = vmatprep.mubr.msk.f32.mxu1 %vm1696_vm1, %v1695_v9  ;;  %v1345_v9 = vld [vmem:[#allocation5 + $0x3] ss:$0 sm:$0xff] }
 0x9da   :  { %v1473_v26 = vpop.f32.mrb[12].mxu1 }
 0x9db   :  { %v1061_v27 = vadd.f32 %v1473_v26, %v1342_v25  ;;  %v1055_v28 = vpop.f32.mrb[13].mxu1 }
 0x9dc   :  { %v1056_v29 = vadd.f32 %v1342_v25, %v1055_v28  ;;  %v1349_v25 = vld [vmem:[#allocation5 + $0x7] ss:$0 sm:$0xff] }
 0x9dd   :  { %v1065_v5 = vmax.f32 %v1061_v27, 0.0 }
 0x9de   :  { %v1064_v2 = vmax.f32 %v1056_v29, 0.0 }
 0x9e0   :  { %1490 = vmatprep.mubr.msk.f32.mxu0 %vm1070_vm4, %v1064_v2 }
 0x9e1   :  { %1491 = vmatmul.mubr.msk.f32.vlgmr.msra.gmra.mrb[8].mxu0 %vm1070_vm4, %v1065_v5 }
 0xab4   :  { %v1492_v30 = vpop.f32.mrb[8].mxu0 }
 0xab5   :  { %v1149_v31 = vadd.f32 %v1492_v30, %v1345_v9  ;;  %v1143_v32 = vpop.f32.mrb[9].mxu0 }
 0xab6   :  { %v1144_v33 = vadd.f32 %v1345_v9, %v1143_v32  ;;  %v1350_v9 = vld [vmem:[#allocation5 + $0x8] ss:$0 sm:$0xff] }
 0xab7   :  { %v1153_v34 = vadd.f32 %v1149_v31, %v978_v3  ;;  %v1348_v3 = vld [vmem:[#allocation5 + $0x6] ss:$0 sm:$0xff] }
 0xab8   :  { %v1152_v35 = vadd.f32 %v1144_v33, %v977_v0 }
 0xab9   :  { %v1157_v36 = vsel %vm81_vm0, %v1153_v34, 0.0 }
 0xaba   :  { %1158 = vadd.xlane.f32.xlu1 %v1157_v36  ;;  %v1154_v37 = vsel %vm81_vm0, %v1152_v35, 0.0 }
 0xabb   :  { %1155 = vadd.xlane.f32.xlu0 %v1154_v37 }
 0xacb   :  { %1576 = vrot.lane.b32.xlu1 %v1575_v39, %s1698_s22 }
 0xb47   :  { %v1159_v40 = vpop.xlane.xlu1 %1158 }
 0xb48   :  { %v1161_v41 = vmul.f32 0.03125, %v1159_v40  ;;  %v1156_v42 = vpop.xlane.xlu0 %1155 }
 0xb49   :  { %v1160_v43 = vmul.f32 0.03125, %v1156_v42 }
 0xb4a   :  { %v1163_v44 = vsub.f32 %v1153_v34, %v1161_v41 }
 0xb4b   :  { %v1162_v45 = vsub.f32 %v1152_v35, %v1160_v43  ;;  %v1577_v53 = vpop.permute.xlu1 %1576 }
 0xb4c   :  { %v1165_v46 = vmul.f32 %v1163_v44, %v1163_v44  ;;  %v1579_v63 = vunpack.i.h.bf16 %v1577_v53  ;;  %v1578_v4 = vunpack.i.l.bf16 %v1577_v53 }
 0xb4d   :  { %v1164_v47 = vmul.f32 %v1162_v45, %v1162_v45 }
 0xb4e   :  { %v1169_v48 = vsel %vm81_vm0, %v1165_v46, 0.0  ;;  %v1225_v14 = vsel %vm1070_vm4, %v1578_v4, %v1579_v63 }
 0xb4f   :  { %1170 = vadd.xlane.f32.xlu1 %v1169_v48  ;;  %v1166_v49 = vsel %vm81_vm0, %v1164_v47, 0.0 }
 0xb50   :  { %1167 = vadd.xlane.f32.xlu0 %v1166_v49 }
 0xb60   :  { %1586 = vrot.lane.b32.xlu1 %v1585_v8, %s1698_s22 }
 0xb64   :  { %1591 = vrot.lane.b32.xlu1 %v1590_v55, %s1698_s22 }
 0xb66   :  { %1581 = vrot.lane.b32.xlu0 %v1580_v56, %s1698_s22  ;;  %s1312_s22 = sshll.u32 %s1705_s1, 4  ;;  %s1313_s22 = int_to_ptr.vmem [resolvable:$true] %s1312_s22 }
 0xb67   :  { %s1663_s6 = scalar_lea.vmem %s1313_s22, 32  ;;  %p1668_p3 = scmp.lt.s32.totalorder %s1313_s22, %s1313_s22 }
 0xb68   :  { %p1664_p2 = scmp.ne.s32.totalorder %s1313_s22, %s1663_s6  ;;  %p1669_p4 = scmp.lt.s32.totalorder %s1663_s6, %s1663_s6 }
 0xb6a   :  { %p1670_p5 = por %p1669_p4, %p1668_p3 }
 0xb6c   :  { %p1671_p6 = pnand %p1670_p5, %p1664_p2 }
 0xbdc   :  { %v1171_v58 = vpop.xlane.xlu1 %1170 }
 0xbdd   :  { %v1173_v59 = vmul.f32 0.03125, %v1171_v58  ;;  %v1168_v60 = vpop.xlane.xlu0 %1167 }
 0xbde   :  { %v1172_v61 = vmul.f32 0.03125, %v1168_v60 }
 0xbdf   :  { %v1175_v62 = vadd.f32 1e-05, %v1173_v59 }
 0xbe0   :  { %v1174_v7 = vadd.f32 1e-05, %v1172_v61  ;;  %v1587_v10 = vpop.permute.xlu1 %1586 }
 0xbe1   :  { %1615 = vrsqrt.f32 %v1175_v62  ;;  %v1582_v54 = vpop.permute.xlu0 %1581  ;;  %v1589_v11 = vunpack.i.h.bf16 %v1587_v10  ;;  %v1588_v51 = vunpack.i.l.bf16 %v1587_v10 }
 0xbe2   :  { %1617 = vrsqrt.f32 %v1174_v7  ;;  %v1584_v12 = vunpack.i.h.bf16 %v1582_v54  ;;  %v1583_v15 = vunpack.i.l.bf16 %v1582_v54 }
 0xbe3   :  { %v1227_v19 = vsel %vm1070_vm4, %v1588_v51, %v1589_v11 }
 0xbe4   :  { %v1226_v16 = vsel %vm1070_vm4, %v1583_v15, %v1584_v12  ;;  %v1592_v17 = vpop.permute.xlu1 %1591 }
 0xbe5   :  { %v1545_v18 = vpack.c.bf16 %v1226_v16, %v1225_v14  ;;  %v1594_v20 = vunpack.i.h.bf16 %v1592_v17  ;;  %v1593_v21 = vunpack.i.l.bf16 %v1592_v17 }
 0xbe7   :  { %1546 = vmatpush3.bf16.msra.mxu1 %v1545_v18  ;;  %v1228_v13 = vsel %vm1070_vm4, %v1593_v21, %v1594_v20 }
 0xbe8   :  { %v1548_v0 = vpack.c.bf16 %v1228_v13, %v1227_v19  ;;  %1547 = vmatprep.subr.bf16.mxu1 %v1704_v57 }
 0xbeb   :  { %v1616_v1 = vpop.eup %1615  ;;  %1549 = vmatpush3.bf16.msra.mxu1 %v1548_v0 }
 0xbec   :  { %v1618_v22 = vpop.eup %1617  ;;  %v1179_v23 = vmul.f32 %v1616_v1, %v1163_v44 }
 0xbed   :  { %v1178_v24 = vmul.f32 %v1618_v22, %v1162_v45 }
 0xbee   :  { %v1185_v26 = vmul.f32 %v1348_v3, %v1179_v23 }
 0xbef   :  { %v1184_v27 = vmul.f32 %v1348_v3, %v1178_v24 }
 0xbf0   :  { %v1191_v28 = vadd.f32 %v1349_v25, %v1185_v26 }
 0xbf1   :  { %v1190_v29 = vadd.f32 %v1349_v25, %v1184_v27 }
 0xbf2   :  { %v1198_v2 = vrot.slane %v1191_v28, 7 }
 0xbf4   :  { %v1200_v5 = vsel %vm1199_vm5, %v1198_v2, %v1190_v29 }
 0xbf5   :  { %1502 = vmatmul.mubr.msk.f32.vlgmr.msra.gmra.mrb[14].mxu1 %vm81_vm0, %v1200_v5 }
 0xcc8   :  { %v1301_v30 = vpop.f32.mrb[14].mxu1 }
 0xcc9   :  { %v1302_v31 = vadd.f32 %v1350_v9, %v1301_v30  ;;  %v1503_v32 = vpop.f32.mrb[15].mxu1 }
 0xccb   :  { %1305 = vst [vmem:[#allocation7] sm:$0x3] %v1302_v31 }
 0xccc   :  { %1674 = shalt.err (!%p1671_p6)
}
 0xccd   :  { %s1675_s9 = scalar_lea.hbm %s1971_s4, 32 }
 0xcce   :  { %p1676_p7 = scmp.ne.s32.totalorder %s1971_s4, %s1675_s9  ;;  %p1679_p8 = scmp.lt.u32.totalorder %s1675_s9, %s1971_s4 }
 0xcd0   :  { %p1681_p9 = pnand %p1679_p8, %p1676_p7 }
 0xcd2   :  { %1684 = shalt.err (!%p1681_p9)
}
 0xcd3   :  { %1315 = dma.vmem_to_hbm [thread:$0]  %s1313_s22, 32, %s1971_s4, [#allocation4]  }
 0xcd4   :  { %1689 = dma.done.wait [#allocation4], 32  }
 0xcd5   :  { %1690 = vsyncadd [#allocation4], 4294967264 }
 0xcd6   :  { %1319 = vsyncpa [#allocation3], 1 }
 0xcd7   :  { %1320 = vsyncpa [#allocation6], 1 }
 0xcd8   :  { %1321 = vsyncpa [#allocation4], 1 }

</bundles_post_ra>
